<compile_context>
chip_gen: v7x
topology: tpu7x:2x2x1
jax: 0.10.0
libtpu: 0.0.40
codegen_flags: <defaults>
</compile_context>

<pallas_src>
import functools

import jax
import jax.numpy as jnp
import numpy as np
from jax.experimental import pallas as pl
from jax.experimental.pallas import tpu as pltpu


def _round_up(v, m):
    return (v + m - 1) // m * m


# --------------------------------------------------------------------------- #
# Kernel
# --------------------------------------------------------------------------- #
def _img_dyn_kernel(x_ref, cmd_ref,
                    w1_ref, w1c_ref, b1_ref,
                    w2_ref, b2_ref,
                    w3_ref, b3_ref,
                    w4_ref, b4_ref,
                    out_ref, *, apply_softmax, cmd_dim):
    # ---- lin1: image part on the MXU (bf16 operands, f32 accumulation) ------
    x = x_ref[...].astype(jnp.bfloat16)          # in-kernel cast (cheap VPU op)
    h1 = jnp.dot(x, w1_ref[...], preferred_element_type=jnp.float32)
    # cmd contribution (contraction dim == cmd_dim == 2): exact f32 VPU FMAs.
    cmd = cmd_ref[...]                           # (tile_b, cmd_dim) f32
    w1c = w1c_ref[...]                           # (cmd_dim, 128)    f32
    for k in range(cmd_dim):                     # static unroll, tiny
        h1 = h1 + cmd[:, k:k + 1] * w1c[k:k + 1, :]
    h1 = jnp.maximum(h1 + b1_ref[...], 0.0)

    # ---- lin2 / lin3 (64-wide hidden zero-padded to 128 lanes: exact math) --
    h2 = jnp.dot(h1.astype(jnp.bfloat16), w2_ref[...],
                 preferred_element_type=jnp.float32) + b2_ref[...]
    h2 = jnp.maximum(h2, 0.0)
    h3 = jnp.dot(h2.astype(jnp.bfloat16), w3_ref[...],
                 preferred_element_type=jnp.float32) + b3_ref[...]
    h3 = jnp.maximum(h3, 0.0)

    # ---- lin4 ----------------------------------------------------------------
    h4 = jnp.dot(h3.astype(jnp.bfloat16), w4_ref[...],
                 preferred_element_type=jnp.float32) + b4_ref[...]

    if apply_softmax:    # trainable=False path: softmax over the pixel axis
        m = jnp.max(h4, axis=-1, keepdims=True)
        e = jnp.exp(h4 - m)
        s = jnp.sum(e, axis=-1, keepdims=True)
        r = pl.reciprocal(s, approx=True)        # EUP vrcp (free slot)
        r = r * (2.0 - s * r)                    # one Newton step -> ~exact 1/s
        h4 = e * r

    out_ref[...] = h4.astype(out_ref.dtype)


# --------------------------------------------------------------------------- #
# Parameter preparation (run once, outside the per-call forward path)
# --------------------------------------------------------------------------- #
def prepare_params(params):
    """Pad / cast weights once.  Layout from init_params(): weights stored
    (in, out); lin1 pre-split into image / cmd parts along its input dim."""
    (w1i, w1c, b1), (w2, b2), (w3, b3), (w4, b4) = params
    hid = w2.shape[1]                      # 64
    hid_pad = _round_up(hid, 128)          # pad hidden width to one lane width

    w1_p = w1i.astype(jnp.bfloat16)                                   # (n_pix,128)
    w1c_p = w1c.astype(jnp.float32)                                   # (cmd,128)
    b1_p = b1.astype(jnp.float32).reshape(1, -1)                      # (1,128)
    w2_p = (jnp.zeros((w2.shape[0], hid_pad), jnp.float32)
            .at[:, :hid].set(w2)).astype(jnp.bfloat16)                # (128,128)
    b2_p = (jnp.zeros((1, hid_pad), jnp.float32)
            .at[:, :hid].set(b2.reshape(1, -1)))                      # (1,128)
    w3_p = (jnp.zeros((hid_pad, w3.shape[1]), jnp.float32)
            .at[:hid, :].set(w3)).astype(jnp.bfloat16)                # (128,128)
    b3_p = b3.astype(jnp.float32).reshape(1, -1)                      # (1,128)
    w4_p = w4.astype(jnp.bfloat16)                                    # (128,n_pix)
    b4_p = b4.astype(jnp.float32).reshape(1, -1)                      # (1,n_pix)
    return (w1_p, w1c_p, b1_p, w2_p, b2_p, w3_p, b3_p, w4_p, b4_p)


def _vmem_capacity_bytes():
    try:
        return int(pltpu.get_tpu_info().vmem_capacity_bytes)
    except Exception:
        return 64 * 1024 * 1024   # conservative: v7x has 64 MiB per TensorCore


# --------------------------------------------------------------------------- #
# Forward wrapper
# --------------------------------------------------------------------------- #
def img_dynamics_forward(x, cmd, prepared_params, *, trainable=True,
                         tile_b=512, out_dtype=None):
    """x: (B, W, H) float32, cmd: (B, cmd_dim) float32.

    Returns (B, W*H) if trainable else (B, W, H) (softmax over flattened
    pixels), matching the PyTorch module.  `prepared_params` comes from
    prepare_params() so weight padding / bf16 casts are not re-done per call.
    """
    B, W, H = x.shape
    n_pix = W * H
    cmd_dim = cmd.shape[1]
    if out_dtype is None:
        # bf16 store halves the dominant HBM stream on the inference path.
        out_dtype = jnp.float32 if trainable else jnp.bfloat16
    out_bytes = jnp.dtype(out_dtype).itemsize

    weights = prepared_params
    hid_pad = weights[3].shape[1]          # padded hidden width (128)

    # -------- VMEM budget: double-buffered I/O tiles + live activations ------
    def tile_bytes(tb):
        io = 2 * tb * n_pix * 4 + 2 * tb * n_pix * out_bytes + 2 * tb * cmd_dim * 4
        # in-kernel temporaries: bf16 input copy, f32 logits + softmax exp,
        # output-cast copy, plus the narrow 128-wide hidden activations.
        act = tb * n_pix * (2 + 4 + 4 + out_bytes) + tb * 4 * 3 * hid_pad
        return io + act

    # resident weights (worst case: default double-buffering of each)
    weight_bytes = 2 * (2 * (n_pix * 128 + 128 * hid_pad + hid_pad * 128
                             + 128 * n_pix)
                        + 4 * (cmd_dim * 128 + 128 + hid_pad + 128 + n_pix))

    vmem_cap = _vmem_capacity_bytes()
    vmem_limit = int(min(100 * 1024 * 1024, int(0.9 * vmem_cap)))
    budget = int(0.8 * vmem_limit)

    # -------- batch tiling (no padding; Pallas masks the partial last tile) --
    if B <= 8:
        tile = B                                   # block dim == full array dim
    else:
        tile = max(8, min(_round_up(tile_b, 8), _round_up(B, 8)))
        if B >= 16:                                # >= 2 grid steps so both TCs
            tile = min(tile, _round_up((B + 1) // 2, 8))   # work on megacore HW
        while tile > 8 and weight_bytes + tile_bytes(tile) > budget:
            tile = max(8, _round_up(tile // 2, 8))
    n_blocks = pl.cdiv(B, tile)

    x_flat = x.reshape(B, n_pix).astype(jnp.float32)   # free for contiguous f32
    cmd_f = cmd.astype(jnp.float32)

    flops = 2 * B * (n_pix * 128 + 128 * hid_pad + hid_pad * 128
                     + 128 * n_pix + cmd_dim * 128)
    cost = pl.CostEstimate(
        flops=int(flops),
        transcendentals=int(B * n_pix if not trainable else 0),
        bytes_accessed=int(B * n_pix * (4 + out_bytes) + B * cmd_dim * 4
                           + weight_bytes // 2),
    )

    kernel = functools.partial(_img_dyn_kernel,
                               apply_softmax=not trainable, cmd_dim=cmd_dim)
    x_spec = pl.BlockSpec((tile, n_pix), lambda i: (i, 0))
    cmd_spec = pl.BlockSpec((tile, cmd_dim), lambda i: (i, 0))
    out_spec = pl.BlockSpec((tile, n_pix), lambda i: (i, 0))

    def weight_spec(a, single_buffer):
        nd = a.ndim
        idx = lambda i: (0,) * nd          # constant index map -> VMEM-resident
        if single_buffer:
            # never re-fetched -> single buffer halves the weight footprint
            return pl.BlockSpec(a.shape, idx, pipeline_mode=pl.Buffered(1))
        return pl.BlockSpec(a.shape, idx)

    def run(single_buffer_weights):
        return pl.pallas_call(
            kernel,
            out_shape=jax.ShapeDtypeStruct((B, n_pix), out_dtype),
            grid=(n_blocks,),
            in_specs=[x_spec, cmd_spec]
                     + [weight_spec(a, single_buffer_weights) for a in weights],
            out_specs=out_spec,
            compiler_params=pltpu.CompilerParams(
                dimension_semantics=("parallel",),
                vmem_limit_bytes=vmem_limit,
            ),
            cost_estimate=cost,
        )(x_flat, cmd_f, *weights)

    try:
        out = run(True)
    except Exception:   # pipeline_mode/Buffered(1) unsupported on this build
        out = run(False)

    if not trainable:
        out = out.reshape(B, W, H)
    return out


# --------------------------------------------------------------------------- #
# Synthetic parameters + pure-JAX reference
# --------------------------------------------------------------------------- #
def init_params(key, width, height, cmd_dim=2):
    """Deterministic synthetic parameters; shapes match ImgDynamics' Linears.
    Weights stored transposed (in, out); lin1 pre-split into image/cmd parts."""
    n_pix = width * height
    dims = [(n_pix + cmd_dim, 128), (128, 64), (64, 128), (128, n_pix)]
    keys = jax.random.split(key, 2 * len(dims))
    layers = []
    for i, (din, dout) in enumerate(dims):
        bound = 1.0 / np.sqrt(din)
        w = jax.random.uniform(keys[2 * i], (din, dout),
                               minval=-bound, maxval=bound, dtype=jnp.float32)
        b = jax.random.uniform(keys[2 * i + 1], (1, dout),
                               minval=-bound, maxval=bound, dtype=jnp.float32)
        layers.append((w, b))
    (w1, b1), l2, l3, l4 = layers
    return ((w1[:n_pix, :], w1[n_pix:, :], b1), l2, l3, l4)


def _reference_forward(x, cmd, params, trainable=True):
    """Pure-JAX reference with the same bf16-operand / f32-accumulation
    numerics as the kernel."""
    (w1i, w1c, b1), (w2, b2), (w3, b3), (w4, b4) = params
    B, W, H = x.shape
    bf = jnp.bfloat16
    inp = x.reshape(B, W * H)
    h1 = (jnp.dot(inp.astype(bf), w1i.astype(bf),
                  preferred_element_type=jnp.float32) + cmd @ w1c + b1)
    h1 = jax.nn.relu(h1)
    h2 = jax.nn.relu(jnp.dot(h1.astype(bf), w2.astype(bf),
                             preferred_element_type=jnp.float32) + b2)
    h3 = jax.nn.relu(jnp.dot(h2.astype(bf), w3.astype(bf),
                             preferred_element_type=jnp.float32) + b3)
    h4 = jnp.dot(h3.astype(bf), w4.astype(bf),
                 preferred_element_type=jnp.float32) + b4
    if not trainable:
        h4 = jax.nn.softmax(h4, axis=1).reshape(B, W, H)
    return h4


if __name__ == "__main__":
    key = jax.random.PRNGKey(0)
    k_x, k_cmd, k_p = jax.random.split(key, 3)

    B, W, H, CMD = 2, 16, 16, 2
    x = jax.random.normal(k_x, (B, W, H), dtype=jnp.float32)
    cmd = jax.random.normal(k_cmd, (B, CMD), dtype=jnp.float32)
    params = init_params(k_p, W, H, CMD)
    prepared = prepare_params(params)      # hoisted: weight pad/cast runs once

    # trainable=True path (module default): output (B, W*H), f32
    out = jax.block_until_ready(
        img_dynamics_forward(x, cmd, prepared, trainable=True))

    # trainable=False (softmax) path: output (B, W, H), bf16 store
    out_sm = jax.block_until_ready(
        img_dynamics_forward(x, cmd, prepared, trainable=False))

    ref = _reference_forward(x, cmd, params, trainable=True)
    ref_sm = _reference_forward(x, cmd, params, trainable=False)
    np.testing.assert_allclose(np.asarray(out), np.asarray(ref),
                               rtol=1e-2, atol=1e-4)
    np.testing.assert_allclose(np.asarray(out_sm.astype(jnp.float32)),
                               np.asarray(ref_sm), rtol=2e-2, atol=1e-3)

    print("KERNEL_OK")
</pallas_src>

<mosaic_0001>
module attributes {stable_mosaic.version = 11 : i64} {
  func.func @_img_dyn_kernel(%arg0: i32, %arg1: memref<2x256xf32, #tpu.memory_space<vmem>>, %arg2: memref<2x2xf32, #tpu.memory_space<vmem>>, %arg3: memref<256x128xbf16, #tpu.memory_space<vmem>>, %arg4: memref<2x128xf32, #tpu.memory_space<vmem>>, %arg5: memref<1x128xf32, #tpu.memory_space<vmem>>, %arg6: memref<128x128xbf16, #tpu.memory_space<vmem>>, %arg7: memref<1x128xf32, #tpu.memory_space<vmem>>, %arg8: memref<128x128xbf16, #tpu.memory_space<vmem>>, %arg9: memref<1x128xf32, #tpu.memory_space<vmem>>, %arg10: memref<128x256xbf16, #tpu.memory_space<vmem>>, %arg11: memref<1x256xf32, #tpu.memory_space<vmem>>, %arg12: memref<2x256xf32, #tpu.memory_space<vmem>>) attributes {dimension_semantics = [#tpu.dimension_semantics<parallel>], iteration_bounds = array<i64: 1>, scalar_prefetch = 0 : i64, scratch_operands = 0 : i64, tpu.core_type = #tpu.core_type<tc>, window_params = [{transform_indices = @transform_0, window_bounds = array<i64: 2, 256>}, {transform_indices = @transform_1, window_bounds = array<i64: 2, 2>}, {pipeline_mode = #tpu.pipeline_mode<synchronous>, transform_indices = @transform_2, window_bounds = array<i64: 256, 128>}, {pipeline_mode = #tpu.pipeline_mode<synchronous>, transform_indices = @transform_3, window_bounds = array<i64: 2, 128>}, {pipeline_mode = #tpu.pipeline_mode<synchronous>, transform_indices = @transform_4, window_bounds = array<i64: 1, 128>}, {pipeline_mode = #tpu.pipeline_mode<synchronous>, transform_indices = @transform_5, window_bounds = array<i64: 128, 128>}, {pipeline_mode = #tpu.pipeline_mode<synchronous>, transform_indices = @transform_6, window_bounds = array<i64: 1, 128>}, {pipeline_mode = #tpu.pipeline_mode<synchronous>, transform_indices = @transform_7, window_bounds = array<i64: 128, 128>}, {pipeline_mode = #tpu.pipeline_mode<synchronous>, transform_indices = @transform_8, window_bounds = array<i64: 1, 128>}, {pipeline_mode = #tpu.pipeline_mode<synchronous>, transform_indices = @transform_9, window_bounds = array<i64: 128, 256>}, {pipeline_mode = #tpu.pipeline_mode<synchronous>, transform_indices = @transform_10, window_bounds = array<i64: 1, 256>}, {transform_indices = @transform_11, window_bounds = array<i64: 2, 256>}]} {
    %c0 = arith.constant 0 : index
    %c0_0 = arith.constant 0 : index
    %0 = vector.load %arg1[%c0, %c0_0] : memref<2x256xf32, #tpu.memory_space<vmem>>, vector<2x256xf32>
    %1 = arith.truncf %0 : vector<2x256xf32> to vector<2x256xbf16>
    %c0_1 = arith.constant 0 : index
    %c0_2 = arith.constant 0 : index
    %2 = vector.load %arg3[%c0_1, %c0_2] : memref<256x128xbf16, #tpu.memory_space<vmem>>, vector<256x128xbf16>
    %cst = arith.constant dense<0.000000e+00> : vector<2x128xf32>
    %3 = tpu.matmul %1, %2, %cst {dimension_numbers = #tpu.dot_dimension_numbers<[1], [0], [0], [1], [0, 0, 1, 1], [], []>} : vector<2x256xbf16>, vector<256x128xbf16>, vector<2x128xf32> -> vector<2x128xf32>
    %c0_3 = arith.constant 0 : index
    %c0_4 = arith.constant 0 : index
    %4 = vector.load %arg2[%c0_3, %c0_4] : memref<2x2xf32, #tpu.memory_space<vmem>>, vector<2x2xf32>
    %c0_5 = arith.constant 0 : index
    %c0_6 = arith.constant 0 : index
    %5 = vector.load %arg4[%c0_5, %c0_6] : memref<2x128xf32, #tpu.memory_space<vmem>>, vector<2x128xf32>
    %6 = vector.extract_strided_slice %4 {offsets = [0, 0], sizes = [2, 1], strides = [1, 1]} : vector<2x2xf32> to vector<2x1xf32>
    %7 = vector.extract_strided_slice %5 {offsets = [0, 0], sizes = [1, 128], strides = [1, 1]} : vector<2x128xf32> to vector<1x128xf32>
    %8 = vector.broadcast %6 : vector<2x1xf32> to vector<2x128xf32>
    %9 = vector.broadcast %7 : vector<1x128xf32> to vector<2x128xf32>
    %10 = arith.mulf %8, %9 : vector<2x128xf32>
    %11 = arith.addf %3, %10 : vector<2x128xf32>
    %12 = vector.extract_strided_slice %4 {offsets = [0, 1], sizes = [2, 1], strides = [1, 1]} : vector<2x2xf32> to vector<2x1xf32>
    %13 = vector.extract_strided_slice %5 {offsets = [1, 0], sizes = [1, 128], strides = [1, 1]} : vector<2x128xf32> to vector<1x128xf32>
    %14 = vector.broadcast %12 : vector<2x1xf32> to vector<2x128xf32>
    %15 = vector.broadcast %13 : vector<1x128xf32> to vector<2x128xf32>
    %16 = arith.mulf %14, %15 : vector<2x128xf32>
    %17 = arith.addf %11, %16 : vector<2x128xf32>
    %c0_7 = arith.constant 0 : index
    %c0_8 = arith.constant 0 : index
    %18 = vector.load %arg5[%c0_7, %c0_8] : memref<1x128xf32, #tpu.memory_space<vmem>>, vector<1x128xf32>
    %19 = vector.broadcast %18 : vector<1x128xf32> to vector<2x128xf32>
    %20 = arith.addf %17, %19 : vector<2x128xf32>
    %cst_9 = arith.constant 0.000000e+00 : f32
    %21 = vector.broadcast %cst_9 : f32 to vector<2x128xf32>
    %22 = arith.maximumf %20, %21 : vector<2x128xf32>
    %23 = arith.truncf %22 : vector<2x128xf32> to vector<2x128xbf16>
    %c0_10 = arith.constant 0 : index
    %c0_11 = arith.constant 0 : index
    %24 = vector.load %arg6[%c0_10, %c0_11] : memref<128x128xbf16, #tpu.memory_space<vmem>>, vector<128x128xbf16>
    %cst_12 = arith.constant dense<0.000000e+00> : vector<2x128xf32>
    %25 = tpu.matmul %23, %24, %cst_12 {dimension_numbers = #tpu.dot_dimension_numbers<[1], [0], [0], [1], [0, 0, 1, 1], [], []>} : vector<2x128xbf16>, vector<128x128xbf16>, vector<2x128xf32> -> vector<2x128xf32>
    %c0_13 = arith.constant 0 : index
    %c0_14 = arith.constant 0 : index
    %26 = vector.load %arg7[%c0_13, %c0_14] : memref<1x128xf32, #tpu.memory_space<vmem>>, vector<1x128xf32>
    %27 = vector.broadcast %26 : vector<1x128xf32> to vector<2x128xf32>
    %28 = arith.addf %25, %27 : vector<2x128xf32>
    %cst_15 = arith.constant 0.000000e+00 : f32
    %29 = vector.broadcast %cst_15 : f32 to vector<2x128xf32>
    %30 = arith.maximumf %28, %29 : vector<2x128xf32>
    %31 = arith.truncf %30 : vector<2x128xf32> to vector<2x128xbf16>
    %c0_16 = arith.constant 0 : index
    %c0_17 = arith.constant 0 : index
    %32 = vector.load %arg8[%c0_16, %c0_17] : memref<128x128xbf16, #tpu.memory_space<vmem>>, vector<128x128xbf16>
    %cst_18 = arith.constant dense<0.000000e+00> : vector<2x128xf32>
    %33 = tpu.matmul %31, %32, %cst_18 {dimension_numbers = #tpu.dot_dimension_numbers<[1], [0], [0], [1], [0, 0, 1, 1], [], []>} : vector<2x128xbf16>, vector<128x128xbf16>, vector<2x128xf32> -> vector<2x128xf32>
    %c0_19 = arith.constant 0 : index
    %c0_20 = arith.constant 0 : index
    %34 = vector.load %arg9[%c0_19, %c0_20] : memref<1x128xf32, #tpu.memory_space<vmem>>, vector<1x128xf32>
    %35 = vector.broadcast %34 : vector<1x128xf32> to vector<2x128xf32>
    %36 = arith.addf %33, %35 : vector<2x128xf32>
    %cst_21 = arith.constant 0.000000e+00 : f32
    %37 = vector.broadcast %cst_21 : f32 to vector<2x128xf32>
    %38 = arith.maximumf %36, %37 : vector<2x128xf32>
    %39 = arith.truncf %38 : vector<2x128xf32> to vector<2x128xbf16>
    %c0_22 = arith.constant 0 : index
    %c0_23 = arith.constant 0 : index
    %40 = vector.load %arg10[%c0_22, %c0_23] : memref<128x256xbf16, #tpu.memory_space<vmem>>, vector<128x256xbf16>
    %cst_24 = arith.constant dense<0.000000e+00> : vector<2x256xf32>
    %41 = tpu.matmul %39, %40, %cst_24 {dimension_numbers = #tpu.dot_dimension_numbers<[1], [0], [0], [1], [0, 0, 1, 1], [], []>} : vector<2x128xbf16>, vector<128x256xbf16>, vector<2x256xf32> -> vector<2x256xf32>
    %c0_25 = arith.constant 0 : index
    %c0_26 = arith.constant 0 : index
    %42 = vector.load %arg11[%c0_25, %c0_26] : memref<1x256xf32, #tpu.memory_space<vmem>>, vector<1x256xf32>
    %43 = vector.broadcast %42 : vector<1x256xf32> to vector<2x256xf32>
    %44 = arith.addf %41, %43 : vector<2x256xf32>
    %c0_27 = arith.constant 0 : index
    %c0_28 = arith.constant 0 : index
    %45 = vector.load %arg12[%c0_27, %c0_28] : memref<2x256xf32, #tpu.memory_space<vmem>>, vector<2x256xf32>
    tpu.vector_store %arg12[%c0_27, %c0_28], %44 {strides = array<i32>} : memref<2x256xf32, #tpu.memory_space<vmem>>, vector<2x256xf32>,
    return
  }
  func.func @transform_0(%arg0: i32) -> (i32, i32) {
    %c0_i32 = arith.constant 0 : i32
    %c0_i32_0 = arith.constant 0 : i32
    return %arg0, %c0_i32 : i32, i32
  }
  func.func @transform_1(%arg0: i32) -> (i32, i32) {
    %c0_i32 = arith.constant 0 : i32
    %c0_i32_0 = arith.constant 0 : i32
    return %arg0, %c0_i32 : i32, i32
  }
  func.func @transform_2(%arg0: i32) -> (i32, i32) {
    %c0_i32 = arith.constant 0 : i32
    %c0_i32_0 = arith.constant 0 : i32
    %c0_i32_1 = arith.constant 0 : i32
    return %c0_i32, %c0_i32_0 : i32, i32
  }
  func.func @transform_3(%arg0: i32) -> (i32, i32) {
    %c0_i32 = arith.constant 0 : i32
    %c0_i32_0 = arith.constant 0 : i32
    %c0_i32_1 = arith.constant 0 : i32
    return %c0_i32, %c0_i32_0 : i32, i32
  }
  func.func @transform_4(%arg0: i32) -> (i32, i32) {
    %c0_i32 = arith.constant 0 : i32
    %c0_i32_0 = arith.constant 0 : i32
    %c0_i32_1 = arith.constant 0 : i32
    return %c0_i32, %c0_i32_0 : i32, i32
  }
  func.func @transform_5(%arg0: i32) -> (i32, i32) {
    %c0_i32 = arith.constant 0 : i32
    %c0_i32_0 = arith.constant 0 : i32
    %c0_i32_1 = arith.constant 0 : i32
    return %c0_i32, %c0_i32_0 : i32, i32
  }
  func.func @transform_6(%arg0: i32) -> (i32, i32) {
    %c0_i32 = arith.constant 0 : i32
    %c0_i32_0 = arith.constant 0 : i32
    %c0_i32_1 = arith.constant 0 : i32
    return %c0_i32, %c0_i32_0 : i32, i32
  }
  func.func @transform_7(%arg0: i32) -> (i32, i32) {
    %c0_i32 = arith.constant 0 : i32
    %c0_i32_0 = arith.constant 0 : i32
    %c0_i32_1 = arith.constant 0 : i32
    return %c0_i32, %c0_i32_0 : i32, i32
  }
  func.func @transform_8(%arg0: i32) -> (i32, i32) {
    %c0_i32 = arith.constant 0 : i32
    %c0_i32_0 = arith.constant 0 : i32
    %c0_i32_1 = arith.constant 0 : i32
    return %c0_i32, %c0_i32_0 : i32, i32
  }
  func.func @transform_9(%arg0: i32) -> (i32, i32) {
    %c0_i32 = arith.constant 0 : i32
    %c0_i32_0 = arith.constant 0 : i32
    %c0_i32_1 = arith.constant 0 : i32
    return %c0_i32, %c0_i32_0 : i32, i32
  }
  func.func @transform_10(%arg0: i32) -> (i32, i32) {
    %c0_i32 = arith.constant 0 : i32
    %c0_i32_0 = arith.constant 0 : i32
    %c0_i32_1 = arith.constant 0 : i32
    return %c0_i32, %c0_i32_0 : i32, i32
  }
  func.func @transform_11(%arg0: i32) -> (i32, i32) {
    %c0_i32 = arith.constant 0 : i32
    %c0_i32_0 = arith.constant 0 : i32
    return %arg0, %c0_i32 : i32, i32
  }
}

module attributes {stable_mosaic.version = 11 : i64} {
  func.func @_img_dyn_kernel(%arg0: i32, %arg1: memref<2x256xf32, #tpu.memory_space<vmem>>, %arg2: memref<2x2xf32, #tpu.memory_space<vmem>>, %arg3: memref<256x128xbf16, #tpu.memory_space<vmem>>, %arg4: memref<2x128xf32, #tpu.memory_space<vmem>>, %arg5: memref<1x128xf32, #tpu.memory_space<vmem>>, %arg6: memref<128x128xbf16, #tpu.memory_space<vmem>>, %arg7: memref<1x128xf32, #tpu.memory_space<vmem>>, %arg8: memref<128x128xbf16, #tpu.memory_space<vmem>>, %arg9: memref<1x128xf32, #tpu.memory_space<vmem>>, %arg10: memref<128x256xbf16, #tpu.memory_space<vmem>>, %arg11: memref<1x256xf32, #tpu.memory_space<vmem>>, %arg12: memref<2x256xf32, #tpu.memory_space<vmem>>) attributes {dimension_semantics = [#tpu.dimension_semantics<parallel>], iteration_bounds = array<i64: 1>, scalar_prefetch = 0 : i64, scratch_operands = 0 : i64, tpu.core_type = #tpu.core_type<tc>, window_params = [{transform_indices = @transform_0, window_bounds = array<i64: 2, 256>}, {transform_indices = @transform_1, window_bounds = array<i64: 2, 2>}, {pipeline_mode = #tpu.pipeline_mode<synchronous>, transform_indices = @transform_2, window_bounds = array<i64: 256, 128>}, {pipeline_mode = #tpu.pipeline_mode<synchronous>, transform_indices = @transform_3, window_bounds = array<i64: 2, 128>}, {pipeline_mode = #tpu.pipeline_mode<synchronous>, transform_indices = @transform_4, window_bounds = array<i64: 1, 128>}, {pipeline_mode = #tpu.pipeline_mode<synchronous>, transform_indices = @transform_5, window_bounds = array<i64: 128, 128>}, {pipeline_mode = #tpu.pipeline_mode<synchronous>, transform_indices = @transform_6, window_bounds = array<i64: 1, 128>}, {pipeline_mode = #tpu.pipeline_mode<synchronous>, transform_indices = @transform_7, window_bounds = array<i64: 128, 128>}, {pipeline_mode = #tpu.pipeline_mode<synchronous>, transform_indices = @transform_8, window_bounds = array<i64: 1, 128>}, {pipeline_mode = #tpu.pipeline_mode<synchronous>, transform_indices = @transform_9, window_bounds = array<i64: 128, 256>}, {pipeline_mode = #tpu.pipeline_mode<synchronous>, transform_indices = @transform_10, window_bounds = array<i64: 1, 256>}, {transform_indices = @transform_11, window_bounds = array<i64: 2, 256>}]} {
    %c0 = arith.constant 0 : index
    %c0_0 = arith.constant 0 : index
    %0 = vector.load %arg1[%c0, %c0_0] : memref<2x256xf32, #tpu.memory_space<vmem>>, vector<2x256xf32>
    %1 = arith.truncf %0 : vector<2x256xf32> to vector<2x256xbf16>
    %c0_1 = arith.constant 0 : index
    %c0_2 = arith.constant 0 : index
    %2 = vector.load %arg3[%c0_1, %c0_2] : memref<256x128xbf16, #tpu.memory_space<vmem>>, vector<256x128xbf16>
    %cst = arith.constant dense<0.000000e+00> : vector<2x128xf32>
    %3 = tpu.matmul %1, %2, %cst {dimension_numbers = #tpu.dot_dimension_numbers<[1], [0], [0], [1], [0, 0, 1, 1], [], []>} : vector<2x256xbf16>, vector<256x128xbf16>, vector<2x128xf32> -> vector<2x128xf32>
    %c0_3 = arith.constant 0 : index
    %c0_4 = arith.constant 0 : index
    %4 = vector.load %arg2[%c0_3, %c0_4] : memref<2x2xf32, #tpu.memory_space<vmem>>, vector<2x2xf32>
    %c0_5 = arith.constant 0 : index
    %c0_6 = arith.constant 0 : index
    %5 = vector.load %arg4[%c0_5, %c0_6] : memref<2x128xf32, #tpu.memory_space<vmem>>, vector<2x128xf32>
    %6 = vector.extract_strided_slice %4 {offsets = [0, 0], sizes = [2, 1], strides = [1, 1]} : vector<2x2xf32> to vector<2x1xf32>
    %7 = vector.extract_strided_slice %5 {offsets = [0, 0], sizes = [1, 128], strides = [1, 1]} : vector<2x128xf32> to vector<1x128xf32>
    %8 = vector.broadcast %6 : vector<2x1xf32> to vector<2x128xf32>
    %9 = vector.broadcast %7 : vector<1x128xf32> to vector<2x128xf32>
    %10 = arith.mulf %8, %9 : vector<2x128xf32>
    %11 = arith.addf %3, %10 : vector<2x128xf32>
    %12 = vector.extract_strided_slice %4 {offsets = [0, 1], sizes = [2, 1], strides = [1, 1]} : vector<2x2xf32> to vector<2x1xf32>
    %13 = vector.extract_strided_slice %5 {offsets = [1, 0], sizes = [1, 128], strides = [1, 1]} : vector<2x128xf32> to vector<1x128xf32>
    %14 = vector.broadcast %12 : vector<2x1xf32> to vector<2x128xf32>
    %15 = vector.broadcast %13 : vector<1x128xf32> to vector<2x128xf32>
    %16 = arith.mulf %14, %15 : vector<2x128xf32>
    %17 = arith.addf %11, %16 : vector<2x128xf32>
    %c0_7 = arith.constant 0 : index
    %c0_8 = arith.constant 0 : index
    %18 = vector.load %arg5[%c0_7, %c0_8] : memref<1x128xf32, #tpu.memory_space<vmem>>, vector<1x128xf32>
    %19 = vector.broadcast %18 : vector<1x128xf32> to vector<2x128xf32>
    %20 = arith.addf %17, %19 : vector<2x128xf32>
    %cst_9 = arith.constant 0.000000e+00 : f32
    %21 = vector.broadcast %cst_9 : f32 to vector<2x128xf32>
    %22 = arith.maximumf %20, %21 : vector<2x128xf32>
    %23 = arith.truncf %22 : vector<2x128xf32> to vector<2x128xbf16>
    %c0_10 = arith.constant 0 : index
    %c0_11 = arith.constant 0 : index
    %24 = vector.load %arg6[%c0_10, %c0_11] : memref<128x128xbf16, #tpu.memory_space<vmem>>, vector<128x128xbf16>
    %cst_12 = arith.constant dense<0.000000e+00> : vector<2x128xf32>
    %25 = tpu.matmul %23, %24, %cst_12 {dimension_numbers = #tpu.dot_dimension_numbers<[1], [0], [0], [1], [0, 0, 1, 1], [], []>} : vector<2x128xbf16>, vector<128x128xbf16>, vector<2x128xf32> -> vector<2x128xf32>
    %c0_13 = arith.constant 0 : index
    %c0_14 = arith.constant 0 : index
    %26 = vector.load %arg7[%c0_13, %c0_14] : memref<1x128xf32, #tpu.memory_space<vmem>>, vector<1x128xf32>
    %27 = vector.broadcast %26 : vector<1x128xf32> to vector<2x128xf32>
    %28 = arith.addf %25, %27 : vector<2x128xf32>
    %cst_15 = arith.constant 0.000000e+00 : f32
    %29 = vector.broadcast %cst_15 : f32 to vector<2x128xf32>
    %30 = arith.maximumf %28, %29 : vector<2x128xf32>
    %31 = arith.truncf %30 : vector<2x128xf32> to vector<2x128xbf16>
    %c0_16 = arith.constant 0 : index
    %c0_17 = arith.constant 0 : index
    %32 = vector.load %arg8[%c0_16, %c0_17] : memref<128x128xbf16, #tpu.memory_space<vmem>>, vector<128x128xbf16>
    %cst_18 = arith.constant dense<0.000000e+00> : vector<2x128xf32>
    %33 = tpu.matmul %31, %32, %cst_18 {dimension_numbers = #tpu.dot_dimension_numbers<[1], [0], [0], [1], [0, 0, 1, 1], [], []>} : vector<2x128xbf16>, vector<128x128xbf16>, vector<2x128xf32> -> vector<2x128xf32>
    %c0_19 = arith.constant 0 : index
    %c0_20 = arith.constant 0 : index
    %34 = vector.load %arg9[%c0_19, %c0_20] : memref<1x128xf32, #tpu.memory_space<vmem>>, vector<1x128xf32>
    %35 = vector.broadcast %34 : vector<1x128xf32> to vector<2x128xf32>
    %36 = arith.addf %33, %35 : vector<2x128xf32>
    %cst_21 = arith.constant 0.000000e+00 : f32
    %37 = vector.broadcast %cst_21 : f32 to vector<2x128xf32>
    %38 = arith.maximumf %36, %37 : vector<2x128xf32>
    %39 = arith.truncf %38 : vector<2x128xf32> to vector<2x128xbf16>
    %c0_22 = arith.constant 0 : index
    %c0_23 = arith.constant 0 : index
    %40 = vector.load %arg10[%c0_22, %c0_23] : memref<128x256xbf16, #tpu.memory_space<vmem>>, vector<128x256xbf16>
    %cst_24 = arith.constant dense<0.000000e+00> : vector<2x256xf32>
    %41 = tpu.matmul %39, %40, %cst_24 {dimension_numbers = #tpu.dot_dimension_numbers<[1], [0], [0], [1], [0, 0, 1, 1], [], []>} : vector<2x128xbf16>, vector<128x256xbf16>, vector<2x256xf32> -> vector<2x256xf32>
    %c0_25 = arith.constant 0 : index
    %c0_26 = arith.constant 0 : index
    %42 = vector.load %arg11[%c0_25, %c0_26] : memref<1x256xf32, #tpu.memory_space<vmem>>, vector<1x256xf32>
    %43 = vector.broadcast %42 : vector<1x256xf32> to vector<2x256xf32>
    %44 = arith.addf %41, %43 : vector<2x256xf32>
    %c0_27 = arith.constant 0 : index
    %c0_28 = arith.constant 0 : index
    %45 = vector.load %arg12[%c0_27, %c0_28] : memref<2x256xf32, #tpu.memory_space<vmem>>, vector<2x256xf32>
    tpu.vector_store %arg12[%c0_27, %c0_28], %44 {strides = array<i32>} : memref<2x256xf32, #tpu.memory_space<vmem>>, vector<2x256xf32>,
    return
  }
  func.func @transform_0(%arg0: i32) -> (i32, i32) {
    %c0_i32 = arith.constant 0 : i32
    %c0_i32_0 = arith.constant 0 : i32
    return %arg0, %c0_i32 : i32, i32
  }
  func.func @transform_1(%arg0: i32) -> (i32, i32) {
    %c0_i32 = arith.constant 0 : i32
    %c0_i32_0 = arith.constant 0 : i32
    return %arg0, %c0_i32 : i32, i32
  }
  func.func @transform_2(%arg0: i32) -> (i32, i32) {
    %c0_i32 = arith.constant 0 : i32
    %c0_i32_0 = arith.constant 0 : i32
    %c0_i32_1 = arith.constant 0 : i32
    return %c0_i32, %c0_i32_0 : i32, i32
  }
  func.func @transform_3(%arg0: i32) -> (i32, i32) {
    %c0_i32 = arith.constant 0 : i32
    %c0_i32_0 = arith.constant 0 : i32
    %c0_i32_1 = arith.constant 0 : i32
    return %c0_i32, %c0_i32_0 : i32, i32
  }
  func.func @transform_4(%arg0: i32) -> (i32, i32) {
    %c0_i32 = arith.constant 0 : i32
    %c0_i32_0 = arith.constant 0 : i32
    %c0_i32_1 = arith.constant 0 : i32
    return %c0_i32, %c0_i32_0 : i32, i32
  }
  func.func @transform_5(%arg0: i32) -> (i32, i32) {
    %c0_i32 = arith.constant 0 : i32
    %c0_i32_0 = arith.constant 0 : i32
    %c0_i32_1 = arith.constant 0 : i32
    return %c0_i32, %c0_i32_0 : i32, i32
  }
  func.func @transform_6(%arg0: i32) -> (i32, i32) {
    %c0_i32 = arith.constant 0 : i32
    %c0_i32_0 = arith.constant 0 : i32
    %c0_i32_1 = arith.constant 0 : i32
    return %c0_i32, %c0_i32_0 : i32, i32
  }
  func.func @transform_7(%arg0: i32) -> (i32, i32) {
    %c0_i32 = arith.constant 0 : i32
    %c0_i32_0 = arith.constant 0 : i32
    %c0_i32_1 = arith.constant 0 : i32
    return %c0_i32, %c0_i32_0 : i32, i32
  }
  func.func @transform_8(%arg0: i32) -> (i32, i32) {
    %c0_i32 = arith.constant 0 : i32
    %c0_i32_0 = arith.constant 0 : i32
    %c0_i32_1 = arith.constant 0 : i32
    return %c0_i32, %c0_i32_0 : i32, i32
  }
  func.func @transform_9(%arg0: i32) -> (i32, i32) {
    %c0_i32 = arith.constant 0 : i32
    %c0_i32_0 = arith.constant 0 : i32
    %c0_i32_1 = arith.constant 0 : i32
    return %c0_i32, %c0_i32_0 : i32, i32
  }
  func.func @transform_10(%arg0: i32) -> (i32, i32) {
    %c0_i32 = arith.constant 0 : i32
    %c0_i32_0 = arith.constant 0 : i32
    %c0_i32_1 = arith.constant 0 : i32
    return %c0_i32, %c0_i32_0 : i32, i32
  }
  func.func @transform_11(%arg0: i32) -> (i32, i32) {
    %c0_i32 = arith.constant 0 : i32
    %c0_i32_0 = arith.constant 0 : i32
    return %arg0, %c0_i32 : i32, i32
  }
}

</mosaic_0001>

<bundles_post_ra>
// kernel: tpu_custom_call.1
= control target key start
LH: loop header
LB: loop body
LE: loop exit
PB: predicated region body
PF: predicated region fallthrough
CT: control target
= control target key end

     0   :  { %16 = vsyncpa [#allocation3], 0  ;;  %s1274_s0 = inlined_call_operand.hbm [shape: f32[2,256], index: 0, kind: input, shape index: {}]   ;;  %s1275_s1 = inlined_call_operand.vmem [shape: f32[2,2], index: 1, kind: input, shape index: {}]   ;;  %s1276_s2 = inlined_call_operand.hbm [shape: bf16[256,128], index: 2, kind: input, shape index: {}]   ;;  %s1277_s3 = inlined_call_operand.vmem [shape: f32[2,128], index: 3, kind: input, shape index: {}]   ;;  %s1278_s4 = inlined_call_operand.vmem [shape: f32[1,128], index: 4, kind: input, shape index: {}]   ;;  %s1279_s5 = inlined_call_operand.hbm [shape: bf16[128,128], index: 5, kind: input, shape index: {}]   ;;  %s1280_s6 = inlined_call_operand.vmem [shape: f32[1,128], index: 6, kind: input, shape index: {}]   ;;  %s1281_s7 = inlined_call_operand.hbm [shape: bf16[128,128], index: 7, kind: input, shape index: {}]   ;;  %s1282_s8 = inlined_call_operand.vmem [shape: f32[1,128], index: 8, kind: input, shape index: {}]   ;;  %s1283_s9 = inlined_call_operand.hbm [shape: bf16[128,256], index: 9, kind: input, shape index: {}]   ;;  %s1284_s10 = inlined_call_operand.vmem [shape: f32[1,256], index: 10, kind: input, shape index: {}]   ;;  %s1285_s11 = inlined_call_operand.hbm [shape: f32[2,256], index: 11, kind: output, shape index: {}]  }
   0x1   :  { %17 = vsyncpa [#allocation6], 0 }
   0x2   :  { %18 = vsyncpa [#allocation9], 0 }
   0x3   :  { %19 = vsyncpa [#allocation4], 0  ;;  %s1069_s17 = smov [#allocation5]   ;;  %s929_s21 = scalar_lea.hbm %s1276_s2, 2048 }
   0x4   :  { %s37_s18 = sshll.u32 %s1069_s17, 4  ;;  %p930_p0 = scmp.ne.s32.totalorder %s1276_s2, %s929_s21  ;;  %s38_s18 = int_to_ptr.vmem [resolvable:$true] %s37_s18 }
   0x5   :  { %p933_p1 = scmp.lt.u32.totalorder %s929_s21, %s1276_s2 }
   0x7   :  { %p935_p2 = pnand %p933_p1, %p930_p0 }
   0x9   :  { %938 = shalt.err (!%p935_p2)
}
   0xa   :  { %s939_s26 = scalar_lea.vmem %s38_s18, 2048  ;;  %p944_p4 = scmp.lt.s32.totalorder %s38_s18, %s38_s18 }
   0xb   :  { %p940_p3 = scmp.ne.s32.totalorder %s38_s18, %s939_s26  ;;  %p945_p5 = scmp.lt.s32.totalorder %s939_s26, %s939_s26 }
   0xd   :  { %p946_p6 = por %p945_p5, %p944_p4 }
   0xf   :  { %p947_p7 = pnand %p946_p6, %p940_p3 }
  0x11   :  { %950 = shalt.err (!%p947_p7)
}
  0x12   :  { %s1070_s27 = smov 64   ;;  %s1071_s28 = smov 4  }
  0x13   :  { %43 = dma.hbm_to_vmem [thread:$0]  %s1276_s2, 2048, %s38_s18, [#allocation6], %s1070_s27, %s1070_s27, %s1071_s28  }
  0x14   :  { %s1072_s12 = smov [#allocation8]   ;;  %s1073_s14 = smov [#allocation2]  }
  0x15   :  { %s67_s13 = sshll.u32 %s1072_s12, 4  ;;  %s26_s15 = sshll.u32 %s1073_s14, 4  ;;  %s68_s13 = int_to_ptr.vmem [resolvable:$true] %s67_s13  ;;  %s27_s15 = int_to_ptr.vmem [resolvable:$true] %s26_s15 }
  0x16   :  { %s951_s19 = scalar_lea.hbm %s1281_s7, 1024 }
  0x17   :  { %p952_p8 = scmp.ne.s32.totalorder %s1281_s7, %s951_s19  ;;  %p955_p9 = scmp.lt.u32.totalorder %s951_s19, %s1281_s7 }
  0x19   :  { %p957_p10 = pnand %p955_p9, %p952_p8 }
  0x1b   :  { %960 = shalt.err (!%p957_p10)
}
  0x1c   :  { %s961_s2 = scalar_lea.vmem %s68_s13, 1024  ;;  %p966_p12 = scmp.lt.s32.totalorder %s68_s13, %s68_s13 }
  0x1d   :  { %p962_p11 = scmp.ne.s32.totalorder %s68_s13, %s961_s2  ;;  %p967_p13 = scmp.lt.s32.totalorder %s961_s2, %s961_s2 }
  0x1f   :  { %p968_p0 = por %p967_p13, %p966_p12 }
  0x21   :  { %p969_p1 = pnand %p968_p0, %p962_p11 }
  0x23   :  { %972 = shalt.err (!%p969_p1)
}
  0x24   :  { %73 = dma.hbm_to_vmem [thread:$0]  %s1281_s7, 1024, %s68_s13, [#allocation9], %s1070_s27, %s1070_s27, %s1071_s28  }
  0x25   :  { %s973_s29 = scalar_lea.hbm %s1274_s0, 64 }
  0x26   :  { %p974_p2 = scmp.ne.s32.totalorder %s1274_s0, %s973_s29  ;;  %p977_p3 = scmp.lt.u32.totalorder %s973_s29, %s1274_s0 }
  0x28   :  { %p979_p4 = pnand %p977_p3, %p974_p2 }
  0x2a   :  { %982 = shalt.err (!%p979_p4)
}
  0x2b   :  { %s983_s17 = scalar_lea.vmem %s27_s15, 64  ;;  %p988_p6 = scmp.lt.s32.totalorder %s27_s15, %s27_s15 }
  0x2c   :  { %p984_p5 = scmp.ne.s32.totalorder %s27_s15, %s983_s17  ;;  %p989_p7 = scmp.lt.s32.totalorder %s983_s17, %s983_s17 }
  0x2e   :  { %p990_p8 = por %p989_p7, %p988_p6 }
  0x30   :  { %p991_p9 = pnand %p990_p8, %p984_p5 }
  0x32   :  { %994 = shalt.err (!%p991_p9)
}
  0x33   :  { %29 = dma.hbm_to_vmem [thread:$0]  %s1274_s0, 64, %s27_s15, [#allocation3]  }
  0x34   :  { %s1074_s19 = smov [#allocation7]   ;;  %s1075_s21 = smov [#allocation10]  }
  0x35   :  { %s53_s20 = sshll.u32 %s1074_s19, 4  ;;  %s81_s22 = sshll.u32 %s1075_s21, 4  ;;  %s54_s20 = int_to_ptr.vmem [resolvable:$true] %s53_s20  ;;  %s82_s22 = int_to_ptr.vmem [resolvable:$true] %s81_s22 }
  0x36   :  { %s995_s18 = scalar_lea.hbm %s1279_s5, 1024 }
  0x37   :  { %p996_p10 = scmp.ne.s32.totalorder %s1279_s5, %s995_s18  ;;  %p999_p11 = scmp.lt.u32.totalorder %s995_s18, %s1279_s5 }
  0x39   :  { %p1001_p12 = pnand %p999_p11, %p996_p10 }
  0x3b   :  { %1004 = shalt.err (!%p1001_p12)
}
  0x3c   :  { %s1005_s0 = scalar_lea.vmem %s54_s20, 1024  ;;  %p1010_p0 = scmp.lt.s32.totalorder %s54_s20, %s54_s20 }
  0x3d   :  { %p1006_p13 = scmp.ne.s32.totalorder %s54_s20, %s1005_s0  ;;  %p1011_p1 = scmp.lt.s32.totalorder %s1005_s0, %s1005_s0 }
  0x3f   :  { %p1012_p2 = por %p1011_p1, %p1010_p0 }
  0x41   :  { %p1013_p3 = pnand %p1012_p2, %p1006_p13 }
  0x43   :  { %1016 = shalt.err (!%p1013_p3)
}
  0x44   :  { %59 = dma.hbm_to_vmem [thread:$0]  %s1279_s5, 1024, %s54_s20, [#allocation6], %s1070_s27, %s1070_s27, %s1071_s28  }
  0x45   :  { %s1017_s16 = scalar_lea.hbm %s1283_s9, 2048 }
  0x46   :  { %p1018_p4 = scmp.ne.s32.totalorder %s1283_s9, %s1017_s16  ;;  %p1021_p5 = scmp.lt.u32.totalorder %s1017_s16, %s1283_s9 }
  0x48   :  { %p1023_p6 = pnand %p1021_p5, %p1018_p4 }
  0x4a   :  { %1026 = shalt.err (!%p1023_p6)
}
  0x4b   :  { %s1027_s21 = scalar_lea.vmem %s82_s22, 2048  ;;  %p1032_p8 = scmp.lt.s32.totalorder %s82_s22, %s82_s22 }
  0x4c   :  { %p1028_p7 = scmp.ne.s32.totalorder %s82_s22, %s1027_s21  ;;  %p1033_p9 = scmp.lt.s32.totalorder %s1027_s21, %s1027_s21 }
  0x4e   :  { %p1034_p10 = por %p1033_p9, %p1032_p8 }
  0x50   :  { %p1035_p11 = pnand %p1034_p10, %p1028_p7 }
  0x52   :  { %1038 = shalt.err (!%p1035_p11)
}
  0x53   :  { %s1076_s5 = smov 128   ;;  %s1077_s27 = smov 8  }
  0x54   :  { %87 = dma.hbm_to_vmem [thread:$0]  %s1283_s9, 2048, %s82_s22, [#allocation9], %s1076_s5, %s1076_s5, %s1077_s27  }
  0x55   :  { %1061 = dma.done.wait [#allocation3], 64  }
  0x56   :  { %1062 = vsyncadd [#allocation3], 4294967232 }
  0x57   :  { %1063 = dma.done.wait [#allocation6], 3072  }
  0x58   :  { %1064 = vsyncadd [#allocation6], 4294964224 }
  0x59   :  { %1065 = dma.done.wait [#allocation9], 3072  }
  0x5a   :  { %1066 = vsyncadd [#allocation9], 4294964224  ;;  %v1078_v0 = vmov 0   ;;  %v1079_v1 = vmov 0.0   ;;  %v873_v2 = vld [vmem:[#allocation5 + $0x40] sm:$0xff]   ;;  %v875_v4 = vld [vmem:[#allocation5 + $0x48] sm:$0xff]   ;;  %v159_v38 = vlaneseq }
  0x5b   :  { %871 = vset.pattern.permute.xlu0 %v1078_v0  ;;  %817 = vmatprep.subr.bf16.mxu1 %v1079_v1  ;;  %v874_v3 = vld [vmem:[#allocation5] sm:$0xff]   ;;  %v876_v5 = vld [vmem:[#allocation5 + $0x8] sm:$0xff]   ;;  %v877_v6 = vld [vmem:[#allocation5 + $0x50] sm:$0xff]   ;;  %v1080_v22 = vmov 1   ;;  %vm1081_vm0 = vmmov 0  }
  0x5c   :  { %777 = vmatprep.subr.bf16.mxu0 %v873_v2  ;;  %v878_v7 = vld [vmem:[#allocation5 + $0x10] sm:$0xff]   ;;  %v879_v8 = vld [vmem:[#allocation5 + $0x58] sm:$0xff]   ;;  %v881_v10 = vld [vmem:[#allocation5 + $0x60] sm:$0xff]   ;;  %833 = vmatprep.mubr.msk.bf16.mxu1 %vm1081_vm0, %v1079_v1  ;;  %v1233_v39 = vshrl.u32 %v159_v38, 7 }
  0x5d   :  { %778 = vmatpush3.bf16.msra.mxu0 %v874_v3  ;;  %v880_v9 = vld [vmem:[#allocation5 + $0x18] sm:$0xff]   ;;  %v882_v11 = vld [vmem:[#allocation5 + $0x20] sm:$0xff]   ;;  %v883_v12 = vld [vmem:[#allocation5 + $0x68] sm:$0xff]  }
  0x5e   :  { %779 = vmatprep.subr.bf16.mxu0 %v875_v4  ;;  %v724_v13 = vld.sshfl [vmem:[#allocation2] sm:$0x33 pattern:$0x76325410]  ;;  %v889_v16 = vld [vmem:[#allocation7] sm:$0xff]   ;;  %v884_v17 = vld [vmem:[#allocation5 + $0x28] sm:$0xff]  }
  0x5f   :  { %v152_v14 = vld [vmem:[%s1275_s1] sm:$0x3]  ;;  %v115_v15 = vcombine.high %v724_v13, %v724_v13  ;;  %818 = vmatpush3.bf16.msra.mxu1 %v889_v16  ;;  %v890_v19 = vld [vmem:[#allocation7 + $0x8] sm:$0xff]   ;;  %v885_v20 = vld [vmem:[#allocation5 + $0x70] sm:$0xff]   ;;  %v118_v28 = vpack.c.bf16 %v724_v13, %v724_v13  ;;  %v161_v41 = vsub.s32 0, %v1233_v39  ;;  %v306_v42 = vsub.s32 1, %v1233_v39 }
  0x60   :  { %156 = vperm.xlu0 %871, %v152_v14   ;;  %819 = vmatprep.subr.bf16.mxu1 %v1079_v1  ;;  %v886_v21 = vld [vmem:[#allocation5 + $0x30] sm:$0xff]   ;;  %v887_v23 = vld [vmem:[#allocation5 + $0x78] sm:$0xff]   ;;  %v893_v27 = vld [vmem:[#allocation7 + $0x20] sm:$0xff]  }
  0x61   :  { %780 = vmatpush3.bf16.msra.mxu0 %v876_v5  ;;  %v119_v18 = vpack.c.bf16 %v115_v15, %v115_v15  ;;  %v891_v24 = vld [vmem:[#allocation7 + $0x10] sm:$0xff]   ;;  %v888_v25 = vld [vmem:[#allocation5 + $0x38] sm:$0xff]   ;;  %v894_v29 = vld [vmem:[#allocation7 + $0x28] sm:$0xff]  }
  0x62   :  { %781 = vmatprep.subr.bf16.mxu0 %v877_v6  ;;  %v892_v26 = vld [vmem:[#allocation7 + $0x18] sm:$0xff]   ;;  %v895_v30 = vld [vmem:[#allocation7 + $0x30] sm:$0xff]   ;;  %v897_v32 = vld [vmem:[#allocation8] sm:$0xff]  }
  0x63   :  { %292 = vmatprep.mubr.bf16.mxu0 %v119_v18  ;;  %820 = vmatpush3.bf16.msra.mxu1 %v890_v19  ;;  %v896_v31 = vld [vmem:[#allocation7 + $0x38] sm:$0xff]   ;;  %v898_v33 = vld [vmem:[#allocation8 + $0x8] sm:$0xff]   ;;  %v899_v34 = vld [vmem:[#allocation8 + $0x10] sm:$0xff]  }
  0x64   :  { %872 = vset.pattern.permute.xlu0 %v1080_v22  ;;  %821 = vmatprep.subr.bf16.mxu1 %v1079_v1  ;;  %v900_v35 = vld [vmem:[#allocation8 + $0x18] sm:$0xff]   ;;  %v901_v36 = vld [vmem:[#allocation8 + $0x20] sm:$0xff]   ;;  %v902_v37 = vld [vmem:[#allocation8 + $0x28] sm:$0xff]  }
  0x65   :  { %782 = vmatpush3.bf16.msra.mxu0 %v878_v7  ;;  %301 = vperm.xlu0 %872, %v152_v14   ;;  %v153_v43 = vld [vmem:[%s1277_s3] sm:$0x3]  ;;  %v903_v60 = vld [vmem:[#allocation8 + $0x30] sm:$0xff]   ;;  %v905_v62 = vld [vmem:[#allocation10] ss:$8 sps:$4 sm:$0xff]  }
  0x66   :  { %783 = vmatprep.subr.bf16.mxu0 %v879_v8  ;;  %v162_v44 = vrot.slane %v153_v43, %v161_v41  ;;  %v307_v45 = vrot.slane %v153_v43, %v306_v42  ;;  %v741_v55 = vld [vmem:[%s1278_s4] ss:$0 sm:$0xff]  ;;  %v907_v63 = vld [vmem:[#allocation10 + $0x4] ss:$8 sps:$4 sm:$0xff]   ;;  %v908_v3 = vld [vmem:[#allocation10 + $0x10] ss:$8 sps:$4 sm:$0xff]  }
  0x67   :  { %822 = vmatpush3.bf16.msra.mxu1 %v891_v24  ;;  %v904_v61 = vld [vmem:[#allocation8 + $0x38] sm:$0xff]   ;;  %v913_v4 = vld [vmem:[#allocation10 + $0x24] ss:$8 sps:$4 sm:$0xff]   ;;  %v911_v5 = vld [vmem:[#allocation10 + $0x20] ss:$8 sps:$4 sm:$0xff]  }
  0x68   :  { %823 = vmatprep.subr.bf16.mxu1 %v1079_v1  ;;  %v910_v2 = vld [vmem:[#allocation10 + $0x14] ss:$8 sps:$4 sm:$0xff]   ;;  %v919_v7 = vld [vmem:[#allocation10 + $0x44] ss:$8 sps:$4 sm:$0xff]  }
  0x69   :  { %784 = vmatpush3.bf16.msra.mxu0 %v880_v9  ;;  %v916_v6 = vld [vmem:[#allocation10 + $0x34] ss:$8 sps:$4 sm:$0xff]   ;;  %v920_v9 = vld [vmem:[#allocation10 + $0x50] ss:$8 sps:$4 sm:$0xff]  }
  0x6a   :  { %785 = vmatprep.subr.bf16.mxu0 %v881_v10  ;;  %v922_v8 = vld [vmem:[#allocation10 + $0x54] ss:$8 sps:$4 sm:$0xff]   ;;  %v925_v10 = vld [vmem:[#allocation10 + $0x64] ss:$8 sps:$4 sm:$0xff]  }
  0x6b   :  { %824 = vmatpush3.bf16.msra.mxu1 %v892_v26  ;;  %v751_v22 = vld [vmem:[%s1282_s8] ss:$0 sm:$0xff]  ;;  %s1082_s8 = smov [#allocation11]  }
  0x6c   :  { %825 = vmatprep.subr.bf16.mxu1 %v1079_v1  ;;  %s713_s29 = sshll.u32 %s1082_s8, 4  ;;  %s714_s29 = int_to_ptr.vmem [resolvable:$true] %s713_s29 }
  0x6d   :  { %786 = vmatpush3.bf16.msra.mxu0 %v882_v11  ;;  %v923_v11 = vld [vmem:[#allocation10 + $0x60] ss:$8 sps:$4 sm:$0xff]   ;;  %s1039_s0 = scalar_lea.vmem %s714_s29, 64  ;;  %p1044_p13 = scmp.lt.s32.totalorder %s714_s29, %s714_s29 }
  0x6e   :  { %787 = vmatprep.subr.bf16.mxu0 %v883_v12  ;;  %v742_v12 = vld [vmem:[%s1280_s6] ss:$0 sm:$0xff]  ;;  %p1040_p12 = scmp.ne.s32.totalorder %s714_s29, %s1039_s0  ;;  %p1045_p0 = scmp.lt.s32.totalorder %s1039_s0, %s1039_s0 }
  0x6f   :  { %826 = vmatpush3.bf16.msra.mxu1 %v893_v27 }
  0x70   :  { %827 = vmatprep.subr.bf16.mxu1 %v1079_v1  ;;  %p1046_p1 = por %p1045_p0, %p1044_p13 }
  0x71   :  { %788 = vmatpush3.bf16.msra.mxu0 %v884_v17 }
  0x72   :  { %789 = vmatprep.subr.bf16.mxu0 %v885_v20  ;;  %v928_v20 = vld [vmem:[#allocation10 + $0x74] ss:$8 sps:$4 sm:$0xff]   ;;  %p1047_p2 = pnand %p1046_p1, %p1040_p12 }
  0x73   :  { %828 = vmatpush3.bf16.msra.mxu1 %v894_v29 }
  0x74   :  { %829 = vmatprep.subr.bf16.mxu1 %v1079_v1 }
  0x75   :  { %790 = vmatpush3.bf16.msra.mxu0 %v886_v21  ;;  %v926_v21 = vld [vmem:[#allocation10 + $0x70] ss:$8 sps:$4 sm:$0xff]  }
  0x76   :  { %791 = vmatprep.subr.bf16.mxu0 %v887_v23 }
  0x77   :  { %830 = vmatpush3.bf16.msra.mxu1 %v895_v30  ;;  %v562_v30 = vld [vmem:[%s1284_s10] sm:$0x3] }
  0x78   :  { %831 = vmatprep.subr.bf16.mxu1 %v1079_v1 }
  0x79   :  { %792 = vmatpush3.bf16.msra.mxu0 %v888_v25 }
  0x7a   :  { %837 = vmatprep.subr.bf16.mxu0 %v1079_v1 }
  0x7b   :  { %832 = vmatpush3.bf16.msra.mxu1 %v896_v31  ;;  %v567_v31 = vrot.slane %v562_v30, %v161_v41 }
  0x7c   :  { %293 = vmatmul.mubr.bf16.vlgmr.msra.gmra.mrb[0].mxu0 %v118_v28  ;;  %654 = vmatprep.subr.bf16.mxu1 %v907_v63 }
  0x7d   :  { %853 = vmatprep.mubr.msk.bf16.mxu0 %vm1081_vm0, %v1079_v1  ;;  %838 = vmatpush3.bf16.msra.mxu0 %v897_v32  ;;  %v571_v32 = vrot.slane %v562_v30, %v306_v42 }
  0x7e   :  { %839 = vmatprep.subr.bf16.mxu0 %v1079_v1 }
  0x81   :  { %840 = vmatpush3.bf16.msra.mxu0 %v898_v33 }
  0x82   :  { %841 = vmatprep.subr.bf16.mxu0 %v1079_v1 }
  0x85   :  { %842 = vmatpush3.bf16.msra.mxu0 %v899_v34 }
  0x86   :  { %843 = vmatprep.subr.bf16.mxu0 %v1079_v1 }
  0x89   :  { %844 = vmatpush3.bf16.msra.mxu0 %v900_v35 }
  0x8a   :  { %845 = vmatprep.subr.bf16.mxu0 %v1079_v1 }
  0x8d   :  { %846 = vmatpush3.bf16.msra.mxu0 %v901_v36 }
  0x8e   :  { %847 = vmatprep.subr.bf16.mxu0 %v1079_v1 }
  0x91   :  { %848 = vmatpush3.bf16.msra.mxu0 %v902_v37 }
  0x92   :  { %849 = vmatprep.subr.bf16.mxu0 %v1079_v1 }
  0x95   :  { %850 = vmatpush3.bf16.msra.mxu0 %v903_v60 }
  0x96   :  { %851 = vmatprep.subr.bf16.mxu0 %v1079_v1  ;;  %v917_v1 = vld [vmem:[#allocation10 + $0x40] ss:$8 sps:$4 sm:$0xff]  }
  0x99   :  { %852 = vmatpush3.bf16.msra.mxu0 %v904_v61 }
  0xdf   :  { %v157_v40 = vpop.permute.xlu0 %156 }
  0xe0   :  { %v163_v49 = vmul.f32 %v162_v44, %v157_v40 }
  0xe4   :  { %v302_v46 = vpop.permute.xlu0 %301 }
  0xe5   :  { %v308_v52 = vmul.f32 %v307_v45, %v302_v46 }
 0x14f   :  { %v793_v47 = vpop.f32.mrb[0].mxu0 }
 0x150   :  { %v794_v48 = vpop.f32.mrb[1].mxu0 }
 0x151   :  { %v795_v50 = vadd.f32 %v794_v48, %v793_v47  ;;  %v796_v51 = vpop.f32.mrb[2].mxu0 }
 0x152   :  { %v797_v53 = vpop.f32.mrb[3].mxu0 }
 0x153   :  { %v295_v54 = vadd.f32 %v795_v50, %v163_v49 }
 0x155   :  { %v309_v56 = vadd.f32 %v308_v52, %v295_v54 }
 0x157   :  { %v317_v57 = vadd.f32 %v741_v55, %v309_v56 }
 0x159   :  { %v318_v58 = vmax.f32 %v317_v57, 0.0 }
 0x15b   :  { %v319_v59 = vpack.c.bf16 %v318_v58, %v318_v58 }
 0x15d   :  { %834 = vmatmul.mubr.bf16.vlgmr.msra.gmra.mrb[0].mxu1 %v319_v59 }
 0x15e   :  { %686 = vmatprep.mubr.bf16.mxu1 %v1078_v0  ;;  %655 = vmatpush1.bf16.msra.mxu1 %v905_v62  ;;  %v914_v0 = vld [vmem:[#allocation10 + $0x30] ss:$8 sps:$4 sm:$0xff]  }
 0x15f   :  { %656 = vmatprep.subr.bf16.mxu1 %v910_v2 }
 0x162   :  { %657 = vmatpush1.bf16.msra.mxu1 %v908_v3 }
 0x163   :  { %658 = vmatprep.subr.bf16.mxu1 %v913_v4 }
 0x166   :  { %659 = vmatpush1.bf16.msra.mxu1 %v911_v5 }
 0x167   :  { %660 = vmatprep.subr.bf16.mxu1 %v916_v6 }
 0x16a   :  { %661 = vmatpush1.bf16.msra.mxu1 %v914_v0 }
 0x16b   :  { %662 = vmatprep.subr.bf16.mxu1 %v919_v7 }
 0x16e   :  { %663 = vmatpush1.bf16.msra.mxu1 %v917_v1 }
 0x16f   :  { %664 = vmatprep.subr.bf16.mxu1 %v922_v8 }
 0x172   :  { %665 = vmatpush1.bf16.msra.mxu1 %v920_v9 }
 0x173   :  { %666 = vmatprep.subr.bf16.mxu1 %v925_v10 }
 0x176   :  { %667 = vmatpush1.bf16.msra.mxu1 %v923_v11 }
 0x177   :  { %668 = vmatprep.subr.bf16.mxu1 %v928_v20 }
 0x17a   :  { %669 = vmatpush1.bf16.msra.mxu1 %v926_v21 }
 0x230   :  { %v425_v13 = vpop.f32.mrb[0].mxu1 }
 0x231   :  { %v426_v14 = vadd.f32 %v742_v12, %v425_v13  ;;  %v835_v15 = vpop.f32.mrb[1].mxu1 }
 0x232   :  { %v428_v16 = vpop.f32.mrb[2].mxu1 }
 0x233   :  { %v431_v17 = vmax.f32 %v426_v14, 0.0  ;;  %v836_v18 = vpop.f32.mrb[3].mxu1 }
 0x235   :  { %v432_v19 = vpack.c.bf16 %v431_v17, %v431_v17 }
 0x237   :  { %854 = vmatmul.mubr.bf16.vlgmr.msra.gmra.mrb[4].mxu0 %v432_v19 }
 0x30a   :  { %v538_v23 = vpop.f32.mrb[4].mxu0 }
 0x30b   :  { %v539_v24 = vadd.f32 %v751_v22, %v538_v23  ;;  %v855_v25 = vpop.f32.mrb[5].mxu0 }
 0x30c   :  { %v541_v26 = vpop.f32.mrb[6].mxu0 }
 0x30d   :  { %v544_v27 = vmax.f32 %v539_v24, 0.0  ;;  %v856_v28 = vpop.f32.mrb[7].mxu0 }
 0x30f   :  { %v545_v29 = vpack.c.bf16 %v544_v27, %v544_v27 }
 0x311   :  { %687 = vmatmul.mubr.bf16.vlgmr.msra.gmra.mrb[4].mxu1 %v545_v29 }
 0x3e4   :  { %v688_v33 = vpop.f32.mrb[4].mxu1 }
 0x3e5   :  { %v689_v34 = vadd.f32 %v688_v33, %v567_v31  ;;  %v690_v35 = vpop.f32.mrb[5].mxu1 }
 0x3e6   :  { %v691_v36 = vadd.f32 %v690_v35, %v571_v32  ;;  %v692_v37 = vpop.f32.mrb[6].mxu1 }
 0x3e7   :  { %v693_v38 = vpop.f32.mrb[7].mxu1 }
 0x3e8   :  { %v697_v40 = vcombine.low %v689_v34, %v691_v36 }
 0x3ea   :  { %776 = vst.sshfl [vmem:[#allocation11] sm:$0x33 pattern:$0x76325410] %v697_v40 }
 0x3eb   :  { %1050 = shalt.err (!%p1047_p2)
}
 0x3ec   :  { %s1051_s30 = scalar_lea.hbm %s1285_s11, 64 }
 0x3ed   :  { %p1052_p3 = scmp.ne.s32.totalorder %s1285_s11, %s1051_s30  ;;  %p1055_p4 = scmp.lt.u32.totalorder %s1051_s30, %s1285_s11 }
 0x3ef   :  { %p1057_p5 = pnand %p1055_p4, %p1052_p3 }
 0x3f1   :  { %1060 = shalt.err (!%p1057_p5)
}
 0x3f2   :  { %716 = dma.vmem_to_hbm [thread:$0]  %s714_s29, 64, %s1285_s11, [#allocation4]  }
 0x3f3   :  { %1067 = dma.done.wait [#allocation4], 64  }
 0x3f4   :  { %1068 = vsyncadd [#allocation4], 4294967232 }
 0x3f5   :  { %720 = vsyncpa [#allocation3], 1 }
 0x3f6   :  { %721 = vsyncpa [#allocation6], 1 }
 0x3f7   :  { %722 = vsyncpa [#allocation9], 1 }
 0x3f8   :  { %723 = vsyncpa [#allocation4], 1 }

// kernel: tpu_custom_call.1
= control target key start
LH: loop header
LB: loop body
LE: loop exit
PB: predicated region body
PF: predicated region fallthrough
CT: control target
= control target key end

     0   :  { %16 = vsyncpa [#allocation3], 0  ;;  %s1274_s0 = inlined_call_operand.hbm [shape: f32[2,256], index: 0, kind: input, shape index: {}]   ;;  %s1275_s1 = inlined_call_operand.vmem [shape: f32[2,2], index: 1, kind: input, shape index: {}]   ;;  %s1276_s2 = inlined_call_operand.hbm [shape: bf16[256,128], index: 2, kind: input, shape index: {}]   ;;  %s1277_s3 = inlined_call_operand.vmem [shape: f32[2,128], index: 3, kind: input, shape index: {}]   ;;  %s1278_s4 = inlined_call_operand.vmem [shape: f32[1,128], index: 4, kind: input, shape index: {}]   ;;  %s1279_s5 = inlined_call_operand.hbm [shape: bf16[128,128], index: 5, kind: input, shape index: {}]   ;;  %s1280_s6 = inlined_call_operand.vmem [shape: f32[1,128], index: 6, kind: input, shape index: {}]   ;;  %s1281_s7 = inlined_call_operand.hbm [shape: bf16[128,128], index: 7, kind: input, shape index: {}]   ;;  %s1282_s8 = inlined_call_operand.vmem [shape: f32[1,128], index: 8, kind: input, shape index: {}]   ;;  %s1283_s9 = inlined_call_operand.hbm [shape: bf16[128,256], index: 9, kind: input, shape index: {}]   ;;  %s1284_s10 = inlined_call_operand.vmem [shape: f32[1,256], index: 10, kind: input, shape index: {}]   ;;  %s1285_s11 = inlined_call_operand.hbm [shape: f32[2,256], index: 11, kind: output, shape index: {}]  }
   0x1   :  { %17 = vsyncpa [#allocation6], 0 }
   0x2   :  { %18 = vsyncpa [#allocation9], 0 }
   0x3   :  { %19 = vsyncpa [#allocation4], 0  ;;  %s1069_s17 = smov [#allocation5]   ;;  %s929_s21 = scalar_lea.hbm %s1276_s2, 2048 }
   0x4   :  { %s37_s18 = sshll.u32 %s1069_s17, 4  ;;  %p930_p0 = scmp.ne.s32.totalorder %s1276_s2, %s929_s21  ;;  %s38_s18 = int_to_ptr.vmem [resolvable:$true] %s37_s18 }
   0x5   :  { %p933_p1 = scmp.lt.u32.totalorder %s929_s21, %s1276_s2 }
   0x7   :  { %p935_p2 = pnand %p933_p1, %p930_p0 }
   0x9   :  { %938 = shalt.err (!%p935_p2)
}
   0xa   :  { %s939_s26 = scalar_lea.vmem %s38_s18, 2048  ;;  %p944_p4 = scmp.lt.s32.totalorder %s38_s18, %s38_s18 }
   0xb   :  { %p940_p3 = scmp.ne.s32.totalorder %s38_s18, %s939_s26  ;;  %p945_p5 = scmp.lt.s32.totalorder %s939_s26, %s939_s26 }
   0xd   :  { %p946_p6 = por %p945_p5, %p944_p4 }
   0xf   :  { %p947_p7 = pnand %p946_p6, %p940_p3 }
  0x11   :  { %950 = shalt.err (!%p947_p7)
}
  0x12   :  { %s1070_s27 = smov 64   ;;  %s1071_s28 = smov 4  }
  0x13   :  { %43 = dma.hbm_to_vmem [thread:$0]  %s1276_s2, 2048, %s38_s18, [#allocation6], %s1070_s27, %s1070_s27, %s1071_s28  }
  0x14   :  { %s1072_s12 = smov [#allocation8]   ;;  %s1073_s14 = smov [#allocation2]  }
  0x15   :  { %s67_s13 = sshll.u32 %s1072_s12, 4  ;;  %s26_s15 = sshll.u32 %s1073_s14, 4  ;;  %s68_s13 = int_to_ptr.vmem [resolvable:$true] %s67_s13  ;;  %s27_s15 = int_to_ptr.vmem [resolvable:$true] %s26_s15 }
  0x16   :  { %s951_s19 = scalar_lea.hbm %s1281_s7, 1024 }
  0x17   :  { %p952_p8 = scmp.ne.s32.totalorder %s1281_s7, %s951_s19  ;;  %p955_p9 = scmp.lt.u32.totalorder %s951_s19, %s1281_s7 }
  0x19   :  { %p957_p10 = pnand %p955_p9, %p952_p8 }
  0x1b   :  { %960 = shalt.err (!%p957_p10)
}
  0x1c   :  { %s961_s2 = scalar_lea.vmem %s68_s13, 1024  ;;  %p966_p12 = scmp.lt.s32.totalorder %s68_s13, %s68_s13 }
  0x1d   :  { %p962_p11 = scmp.ne.s32.totalorder %s68_s13, %s961_s2  ;;  %p967_p13 = scmp.lt.s32.totalorder %s961_s2, %s961_s2 }
  0x1f   :  { %p968_p0 = por %p967_p13, %p966_p12 }
  0x21   :  { %p969_p1 = pnand %p968_p0, %p962_p11 }
  0x23   :  { %972 = shalt.err (!%p969_p1)
}
  0x24   :  { %73 = dma.hbm_to_vmem [thread:$0]  %s1281_s7, 1024, %s68_s13, [#allocation9], %s1070_s27, %s1070_s27, %s1071_s28  }
  0x25   :  { %s973_s29 = scalar_lea.hbm %s1274_s0, 64 }
  0x26   :  { %p974_p2 = scmp.ne.s32.totalorder %s1274_s0, %s973_s29  ;;  %p977_p3 = scmp.lt.u32.totalorder %s973_s29, %s1274_s0 }
  0x28   :  { %p979_p4 = pnand %p977_p3, %p974_p2 }
  0x2a   :  { %982 = shalt.err (!%p979_p4)
}
  0x2b   :  { %s983_s17 = scalar_lea.vmem %s27_s15, 64  ;;  %p988_p6 = scmp.lt.s32.totalorder %s27_s15, %s27_s15 }
  0x2c   :  { %p984_p5 = scmp.ne.s32.totalorder %s27_s15, %s983_s17  ;;  %p989_p7 = scmp.lt.s32.totalorder %s983_s17, %s983_s17 }
  0x2e   :  { %p990_p8 = por %p989_p7, %p988_p6 }
  0x30   :  { %p991_p9 = pnand %p990_p8, %p984_p5 }
  0x32   :  { %994 = shalt.err (!%p991_p9)
}
  0x33   :  { %29 = dma.hbm_to_vmem [thread:$0]  %s1274_s0, 64, %s27_s15, [#allocation3]  }
  0x34   :  { %s1074_s19 = smov [#allocation7]   ;;  %s1075_s21 = smov [#allocation10]  }
  0x35   :  { %s53_s20 = sshll.u32 %s1074_s19, 4  ;;  %s81_s22 = sshll.u32 %s1075_s21, 4  ;;  %s54_s20 = int_to_ptr.vmem [resolvable:$true] %s53_s20  ;;  %s82_s22 = int_to_ptr.vmem [resolvable:$true] %s81_s22 }
  0x36   :  { %s995_s18 = scalar_lea.hbm %s1279_s5, 1024 }
  0x37   :  { %p996_p10 = scmp.ne.s32.totalorder %s1279_s5, %s995_s18  ;;  %p999_p11 = scmp.lt.u32.totalorder %s995_s18, %s1279_s5 }
  0x39   :  { %p1001_p12 = pnand %p999_p11, %p996_p10 }
  0x3b   :  { %1004 = shalt.err (!%p1001_p12)
}
  0x3c   :  { %s1005_s0 = scalar_lea.vmem %s54_s20, 1024  ;;  %p1010_p0 = scmp.lt.s32.totalorder %s54_s20, %s54_s20 }
  0x3d   :  { %p1006_p13 = scmp.ne.s32.totalorder %s54_s20, %s1005_s0  ;;  %p1011_p1 = scmp.lt.s32.totalorder %s1005_s0, %s1005_s0 }
  0x3f   :  { %p1012_p2 = por %p1011_p1, %p1010_p0 }
  0x41   :  { %p1013_p3 = pnand %p1012_p2, %p1006_p13 }
  0x43   :  { %1016 = shalt.err (!%p1013_p3)
}
  0x44   :  { %59 = dma.hbm_to_vmem [thread:$0]  %s1279_s5, 1024, %s54_s20, [#allocation6], %s1070_s27, %s1070_s27, %s1071_s28  }
  0x45   :  { %s1017_s16 = scalar_lea.hbm %s1283_s9, 2048 }
  0x46   :  { %p1018_p4 = scmp.ne.s32.totalorder %s1283_s9, %s1017_s16  ;;  %p1021_p5 = scmp.lt.u32.totalorder %s1017_s16, %s1283_s9 }
  0x48   :  { %p1023_p6 = pnand %p1021_p5, %p1018_p4 }
  0x4a   :  { %1026 = shalt.err (!%p1023_p6)
}
  0x4b   :  { %s1027_s21 = scalar_lea.vmem %s82_s22, 2048  ;;  %p1032_p8 = scmp.lt.s32.totalorder %s82_s22, %s82_s22 }
  0x4c   :  { %p1028_p7 = scmp.ne.s32.totalorder %s82_s22, %s1027_s21  ;;  %p1033_p9 = scmp.lt.s32.totalorder %s1027_s21, %s1027_s21 }
  0x4e   :  { %p1034_p10 = por %p1033_p9, %p1032_p8 }
  0x50   :  { %p1035_p11 = pnand %p1034_p10, %p1028_p7 }
  0x52   :  { %1038 = shalt.err (!%p1035_p11)
}
  0x53   :  { %s1076_s5 = smov 128   ;;  %s1077_s27 = smov 8  }
  0x54   :  { %87 = dma.hbm_to_vmem [thread:$0]  %s1283_s9, 2048, %s82_s22, [#allocation9], %s1076_s5, %s1076_s5, %s1077_s27  }
  0x55   :  { %1061 = dma.done.wait [#allocation3], 64  }
  0x56   :  { %1062 = vsyncadd [#allocation3], 4294967232 }
  0x57   :  { %1063 = dma.done.wait [#allocation6], 3072  }
  0x58   :  { %1064 = vsyncadd [#allocation6], 4294964224 }
  0x59   :  { %1065 = dma.done.wait [#allocation9], 3072  }
  0x5a   :  { %1066 = vsyncadd [#allocation9], 4294964224  ;;  %v1078_v0 = vmov 0   ;;  %v1079_v1 = vmov 0.0   ;;  %v873_v2 = vld [vmem:[#allocation5 + $0x40] sm:$0xff]   ;;  %v875_v4 = vld [vmem:[#allocation5 + $0x48] sm:$0xff]   ;;  %v159_v38 = vlaneseq }
  0x5b   :  { %871 = vset.pattern.permute.xlu0 %v1078_v0  ;;  %817 = vmatprep.subr.bf16.mxu1 %v1079_v1  ;;  %v874_v3 = vld [vmem:[#allocation5] sm:$0xff]   ;;  %v876_v5 = vld [vmem:[#allocation5 + $0x8] sm:$0xff]   ;;  %v877_v6 = vld [vmem:[#allocation5 + $0x50] sm:$0xff]   ;;  %v1080_v22 = vmov 1   ;;  %vm1081_vm0 = vmmov 0  }
  0x5c   :  { %777 = vmatprep.subr.bf16.mxu0 %v873_v2  ;;  %v878_v7 = vld [vmem:[#allocation5 + $0x10] sm:$0xff]   ;;  %v879_v8 = vld [vmem:[#allocation5 + $0x58] sm:$0xff]   ;;  %v881_v10 = vld [vmem:[#allocation5 + $0x60] sm:$0xff]   ;;  %833 = vmatprep.mubr.msk.bf16.mxu1 %vm1081_vm0, %v1079_v1  ;;  %v1233_v39 = vshrl.u32 %v159_v38, 7 }
  0x5d   :  { %778 = vmatpush3.bf16.msra.mxu0 %v874_v3  ;;  %v880_v9 = vld [vmem:[#allocation5 + $0x18] sm:$0xff]   ;;  %v882_v11 = vld [vmem:[#allocation5 + $0x20] sm:$0xff]   ;;  %v883_v12 = vld [vmem:[#allocation5 + $0x68] sm:$0xff]  }
  0x5e   :  { %779 = vmatprep.subr.bf16.mxu0 %v875_v4  ;;  %v724_v13 = vld.sshfl [vmem:[#allocation2] sm:$0x33 pattern:$0x76325410]  ;;  %v889_v16 = vld [vmem:[#allocation7] sm:$0xff]   ;;  %v884_v17 = vld [vmem:[#allocation5 + $0x28] sm:$0xff]  }
  0x5f   :  { %v152_v14 = vld [vmem:[%s1275_s1] sm:$0x3]  ;;  %v115_v15 = vcombine.high %v724_v13, %v724_v13  ;;  %818 = vmatpush3.bf16.msra.mxu1 %v889_v16  ;;  %v890_v19 = vld [vmem:[#allocation7 + $0x8] sm:$0xff]   ;;  %v885_v20 = vld [vmem:[#allocation5 + $0x70] sm:$0xff]   ;;  %v118_v28 = vpack.c.bf16 %v724_v13, %v724_v13  ;;  %v161_v41 = vsub.s32 0, %v1233_v39  ;;  %v306_v42 = vsub.s32 1, %v1233_v39 }
  0x60   :  { %156 = vperm.xlu0 %871, %v152_v14   ;;  %819 = vmatprep.subr.bf16.mxu1 %v1079_v1  ;;  %v886_v21 = vld [vmem:[#allocation5 + $0x30] sm:$0xff]   ;;  %v887_v23 = vld [vmem:[#allocation5 + $0x78] sm:$0xff]   ;;  %v893_v27 = vld [vmem:[#allocation7 + $0x20] sm:$0xff]  }
  0x61   :  { %780 = vmatpush3.bf16.msra.mxu0 %v876_v5  ;;  %v119_v18 = vpack.c.bf16 %v115_v15, %v115_v15  ;;  %v891_v24 = vld [vmem:[#allocation7 + $0x10] sm:$0xff]   ;;  %v888_v25 = vld [vmem:[#allocation5 + $0x38] sm:$0xff]   ;;  %v894_v29 = vld [vmem:[#allocation7 + $0x28] sm:$0xff]  }
  0x62   :  { %781 = vmatprep.subr.bf16.mxu0 %v877_v6  ;;  %v892_v26 = vld [vmem:[#allocation7 + $0x18] sm:$0xff]   ;;  %v895_v30 = vld [vmem:[#allocation7 + $0x30] sm:$0xff]   ;;  %v897_v32 = vld [vmem:[#allocation8] sm:$0xff]  }
  0x63   :  { %292 = vmatprep.mubr.bf16.mxu0 %v119_v18  ;;  %820 = vmatpush3.bf16.msra.mxu1 %v890_v19  ;;  %v896_v31 = vld [vmem:[#allocation7 + $0x38] sm:$0xff]   ;;  %v898_v33 = vld [vmem:[#allocation8 + $0x8] sm:$0xff]   ;;  %v899_v34 = vld [vmem:[#allocation8 + $0x10] sm:$0xff]  }
  0x64   :  { %872 = vset.pattern.permute.xlu0 %v1080_v22  ;;  %821 = vmatprep.subr.bf16.mxu1 %v1079_v1  ;;  %v900_v35 = vld [vmem:[#allocation8 + $0x18] sm:$0xff]   ;;  %v901_v36 = vld [vmem:[#allocation8 + $0x20] sm:$0xff]   ;;  %v902_v37 = vld [vmem:[#allocation8 + $0x28] sm:$0xff]  }
  0x65   :  { %782 = vmatpush3.bf16.msra.mxu0 %v878_v7  ;;  %301 = vperm.xlu0 %872, %v152_v14   ;;  %v153_v43 = vld [vmem:[%s1277_s3] sm:$0x3]  ;;  %v903_v60 = vld [vmem:[#allocation8 + $0x30] sm:$0xff]   ;;  %v905_v62 = vld [vmem:[#allocation10] ss:$8 sps:$4 sm:$0xff]  }
  0x66   :  { %783 = vmatprep.subr.bf16.mxu0 %v879_v8  ;;  %v162_v44 = vrot.slane %v153_v43, %v161_v41  ;;  %v307_v45 = vrot.slane %v153_v43, %v306_v42  ;;  %v741_v55 = vld [vmem:[%s1278_s4] ss:$0 sm:$0xff]  ;;  %v907_v63 = vld [vmem:[#allocation10 + $0x4] ss:$8 sps:$4 sm:$0xff]   ;;  %v908_v3 = vld [vmem:[#allocation10 + $0x10] ss:$8 sps:$4 sm:$0xff]  }
  0x67   :  { %822 = vmatpush3.bf16.msra.mxu1 %v891_v24  ;;  %v904_v61 = vld [vmem:[#allocation8 + $0x38] sm:$0xff]   ;;  %v913_v4 = vld [vmem:[#allocation10 + $0x24] ss:$8 sps:$4 sm:$0xff]   ;;  %v911_v5 = vld [vmem:[#allocation10 + $0x20] ss:$8 sps:$4 sm:$0xff]  }
  0x68   :  { %823 = vmatprep.subr.bf16.mxu1 %v1079_v1  ;;  %v910_v2 = vld [vmem:[#allocation10 + $0x14] ss:$8 sps:$4 sm:$0xff]   ;;  %v919_v7 = vld [vmem:[#allocation10 + $0x44] ss:$8 sps:$4 sm:$0xff]  }
  0x69   :  { %784 = vmatpush3.bf16.msra.mxu0 %v880_v9  ;;  %v916_v6 = vld [vmem:[#allocation10 + $0x34] ss:$8 sps:$4 sm:$0xff]   ;;  %v920_v9 = vld [vmem:[#allocation10 + $0x50] ss:$8 sps:$4 sm:$0xff]  }
  0x6a   :  { %785 = vmatprep.subr.bf16.mxu0 %v881_v10  ;;  %v922_v8 = vld [vmem:[#allocation10 + $0x54] ss:$8 sps:$4 sm:$0xff]   ;;  %v925_v10 = vld [vmem:[#allocation10 + $0x64] ss:$8 sps:$4 sm:$0xff]  }
  0x6b   :  { %824 = vmatpush3.bf16.msra.mxu1 %v892_v26  ;;  %v751_v22 = vld [vmem:[%s1282_s8] ss:$0 sm:$0xff]  ;;  %s1082_s8 = smov [#allocation11]  }
  0x6c   :  { %825 = vmatprep.subr.bf16.mxu1 %v1079_v1  ;;  %s713_s29 = sshll.u32 %s1082_s8, 4  ;;  %s714_s29 = int_to_ptr.vmem [resolvable:$true] %s713_s29 }
  0x6d   :  { %786 = vmatpush3.bf16.msra.mxu0 %v882_v11  ;;  %v923_v11 = vld [vmem:[#allocation10 + $0x60] ss:$8 sps:$4 sm:$0xff]   ;;  %s1039_s0 = scalar_lea.vmem %s714_s29, 64  ;;  %p1044_p13 = scmp.lt.s32.totalorder %s714_s29, %s714_s29 }
  0x6e   :  { %787 = vmatprep.subr.bf16.mxu0 %v883_v12  ;;  %v742_v12 = vld [vmem:[%s1280_s6] ss:$0 sm:$0xff]  ;;  %p1040_p12 = scmp.ne.s32.totalorder %s714_s29, %s1039_s0  ;;  %p1045_p0 = scmp.lt.s32.totalorder %s1039_s0, %s1039_s0 }
  0x6f   :  { %826 = vmatpush3.bf16.msra.mxu1 %v893_v27 }
  0x70   :  { %827 = vmatprep.subr.bf16.mxu1 %v1079_v1  ;;  %p1046_p1 = por %p1045_p0, %p1044_p13 }
  0x71   :  { %788 = vmatpush3.bf16.msra.mxu0 %v884_v17 }
  0x72   :  { %789 = vmatprep.subr.bf16.mxu0 %v885_v20  ;;  %v928_v20 = vld [vmem:[#allocation10 + $0x74] ss:$8 sps:$4 sm:$0xff]   ;;  %p1047_p2 = pnand %p1046_p1, %p1040_p12 }
  0x73   :  { %828 = vmatpush3.bf16.msra.mxu1 %v894_v29 }
  0x74   :  { %829 = vmatprep.subr.bf16.mxu1 %v1079_v1 }
  0x75   :  { %790 = vmatpush3.bf16.msra.mxu0 %v886_v21  ;;  %v926_v21 = vld [vmem:[#allocation10 + $0x70] ss:$8 sps:$4 sm:$0xff]  }
  0x76   :  { %791 = vmatprep.subr.bf16.mxu0 %v887_v23 }
  0x77   :  { %830 = vmatpush3.bf16.msra.mxu1 %v895_v30  ;;  %v562_v30 = vld [vmem:[%s1284_s10] sm:$0x3] }
  0x78   :  { %831 = vmatprep.subr.bf16.mxu1 %v1079_v1 }
  0x79   :  { %792 = vmatpush3.bf16.msra.mxu0 %v888_v25 }
  0x7a   :  { %837 = vmatprep.subr.bf16.mxu0 %v1079_v1 }
  0x7b   :  { %832 = vmatpush3.bf16.msra.mxu1 %v896_v31  ;;  %v567_v31 = vrot.slane %v562_v30, %v161_v41 }
  0x7c   :  { %293 = vmatmul.mubr.bf16.vlgmr.msra.gmra.mrb[0].mxu0 %v118_v28  ;;  %654 = vmatprep.subr.bf16.mxu1 %v907_v63 }
  0x7d   :  { %853 = vmatprep.mubr.msk.bf16.mxu0 %vm1081_vm0, %v1079_v1  ;;  %838 = vmatpush3.bf16.msra.mxu0 %v897_v32  ;;  %v571_v32 = vrot.slane %v562_v30, %v306_v42 }
  0x7e   :  { %839 = vmatprep.subr.bf16.mxu0 %v1079_v1 }
  0x81   :  { %840 = vmatpush3.bf16.msra.mxu0 %v898_v33 }
  0x82   :  { %841 = vmatprep.subr.bf16.mxu0 %v1079_v1 }
  0x85   :  { %842 = vmatpush3.bf16.msra.mxu0 %v899_v34 }
  0x86   :  { %843 = vmatprep.subr.bf16.mxu0 %v1079_v1 }
  0x89   :  { %844 = vmatpush3.bf16.msra.mxu0 %v900_v35 }
  0x8a   :  { %845 = vmatprep.subr.bf16.mxu0 %v1079_v1 }
  0x8d   :  { %846 = vmatpush3.bf16.msra.mxu0 %v901_v36 }
  0x8e   :  { %847 = vmatprep.subr.bf16.mxu0 %v1079_v1 }
  0x91   :  { %848 = vmatpush3.bf16.msra.mxu0 %v902_v37 }
  0x92   :  { %849 = vmatprep.subr.bf16.mxu0 %v1079_v1 }
  0x95   :  { %850 = vmatpush3.bf16.msra.mxu0 %v903_v60 }
  0x96   :  { %851 = vmatprep.subr.bf16.mxu0 %v1079_v1  ;;  %v917_v1 = vld [vmem:[#allocation10 + $0x40] ss:$8 sps:$4 sm:$0xff]  }
  0x99   :  { %852 = vmatpush3.bf16.msra.mxu0 %v904_v61 }
  0xdf   :  { %v157_v40 = vpop.permute.xlu0 %156 }
  0xe0   :  { %v163_v49 = vmul.f32 %v162_v44, %v157_v40 }
  0xe4   :  { %v302_v46 = vpop.permute.xlu0 %301 }
  0xe5   :  { %v308_v52 = vmul.f32 %v307_v45, %v302_v46 }
 0x14f   :  { %v793_v47 = vpop.f32.mrb[0].mxu0 }
 0x150   :  { %v794_v48 = vpop.f32.mrb[1].mxu0 }
 0x151   :  { %v795_v50 = vadd.f32 %v794_v48, %v793_v47  ;;  %v796_v51 = vpop.f32.mrb[2].mxu0 }
 0x152   :  { %v797_v53 = vpop.f32.mrb[3].mxu0 }
 0x153   :  { %v295_v54 = vadd.f32 %v795_v50, %v163_v49 }
 0x155   :  { %v309_v56 = vadd.f32 %v308_v52, %v295_v54 }
 0x157   :  { %v317_v57 = vadd.f32 %v741_v55, %v309_v56 }
 0x159   :  { %v318_v58 = vmax.f32 %v317_v57, 0.0 }
 0x15b   :  { %v319_v59 = vpack.c.bf16 %v318_v58, %v318_v58 }
 0x15d   :  { %834 = vmatmul.mubr.bf16.vlgmr.msra.gmra.mrb[0].mxu1 %v319_v59 }
 0x15e   :  { %686 = vmatprep.mubr.bf16.mxu1 %v1078_v0  ;;  %655 = vmatpush1.bf16.msra.mxu1 %v905_v62  ;;  %v914_v0 = vld [vmem:[#allocation10 + $0x30] ss:$8 sps:$4 sm:$0xff]  }
 0x15f   :  { %656 = vmatprep.subr.bf16.mxu1 %v910_v2 }
 0x162   :  { %657 = vmatpush1.bf16.msra.mxu1 %v908_v3 }
 0x163   :  { %658 = vmatprep.subr.bf16.mxu1 %v913_v4 }
 0x166   :  { %659 = vmatpush1.bf16.msra.mxu1 %v911_v5 }
 0x167   :  { %660 = vmatprep.subr.bf16.mxu1 %v916_v6 }
 0x16a   :  { %661 = vmatpush1.bf16.msra.mxu1 %v914_v0 }
 0x16b   :  { %662 = vmatprep.subr.bf16.mxu1 %v919_v7 }
 0x16e   :  { %663 = vmatpush1.bf16.msra.mxu1 %v917_v1 }
 0x16f   :  { %664 = vmatprep.subr.bf16.mxu1 %v922_v8 }
 0x172   :  { %665 = vmatpush1.bf16.msra.mxu1 %v920_v9 }
 0x173   :  { %666 = vmatprep.subr.bf16.mxu1 %v925_v10 }
 0x176   :  { %667 = vmatpush1.bf16.msra.mxu1 %v923_v11 }
 0x177   :  { %668 = vmatprep.subr.bf16.mxu1 %v928_v20 }
 0x17a   :  { %669 = vmatpush1.bf16.msra.mxu1 %v926_v21 }
 0x230   :  { %v425_v13 = vpop.f32.mrb[0].mxu1 }
 0x231   :  { %v426_v14 = vadd.f32 %v742_v12, %v425_v13  ;;  %v835_v15 = vpop.f32.mrb[1].mxu1 }
 0x232   :  { %v428_v16 = vpop.f32.mrb[2].mxu1 }
 0x233   :  { %v431_v17 = vmax.f32 %v426_v14, 0.0  ;;  %v836_v18 = vpop.f32.mrb[3].mxu1 }
 0x235   :  { %v432_v19 = vpack.c.bf16 %v431_v17, %v431_v17 }
 0x237   :  { %854 = vmatmul.mubr.bf16.vlgmr.msra.gmra.mrb[4].mxu0 %v432_v19 }
 0x30a   :  { %v538_v23 = vpop.f32.mrb[4].mxu0 }
 0x30b   :  { %v539_v24 = vadd.f32 %v751_v22, %v538_v23  ;;  %v855_v25 = vpop.f32.mrb[5].mxu0 }
 0x30c   :  { %v541_v26 = vpop.f32.mrb[6].mxu0 }
 0x30d   :  { %v544_v27 = vmax.f32 %v539_v24, 0.0  ;;  %v856_v28 = vpop.f32.mrb[7].mxu0 }
 0x30f   :  { %v545_v29 = vpack.c.bf16 %v544_v27, %v544_v27 }
 0x311   :  { %687 = vmatmul.mubr.bf16.vlgmr.msra.gmra.mrb[4].mxu1 %v545_v29 }
 0x3e4   :  { %v688_v33 = vpop.f32.mrb[4].mxu1 }
 0x3e5   :  { %v689_v34 = vadd.f32 %v688_v33, %v567_v31  ;;  %v690_v35 = vpop.f32.mrb[5].mxu1 }
 0x3e6   :  { %v691_v36 = vadd.f32 %v690_v35, %v571_v32  ;;  %v692_v37 = vpop.f32.mrb[6].mxu1 }
 0x3e7   :  { %v693_v38 = vpop.f32.mrb[7].mxu1 }
 0x3e8   :  { %v697_v40 = vcombine.low %v689_v34, %v691_v36 }
 0x3ea   :  { %776 = vst.sshfl [vmem:[#allocation11] sm:$0x33 pattern:$0x76325410] %v697_v40 }
 0x3eb   :  { %1050 = shalt.err (!%p1047_p2)
}
 0x3ec   :  { %s1051_s30 = scalar_lea.hbm %s1285_s11, 64 }
 0x3ed   :  { %p1052_p3 = scmp.ne.s32.totalorder %s1285_s11, %s1051_s30  ;;  %p1055_p4 = scmp.lt.u32.totalorder %s1051_s30, %s1285_s11 }
 0x3ef   :  { %p1057_p5 = pnand %p1055_p4, %p1052_p3 }
 0x3f1   :  { %1060 = shalt.err (!%p1057_p5)
}
 0x3f2   :  { %716 = dma.vmem_to_hbm [thread:$0]  %s714_s29, 64, %s1285_s11, [#allocation4]  }
 0x3f3   :  { %1067 = dma.done.wait [#allocation4], 64  }
 0x3f4   :  { %1068 = vsyncadd [#allocation4], 4294967232 }
 0x3f5   :  { %720 = vsyncpa [#allocation3], 1 }
 0x3f6   :  { %721 = vsyncpa [#allocation6], 1 }
 0x3f7   :  { %722 = vsyncpa [#allocation9], 1 }
 0x3f8   :  { %723 = vsyncpa [#allocation4], 1 }

</bundles_post_ra>
